<compile_context>
chip_gen: v6e
topology: v6e:2x2x1
jax: 0.10.0
libtpu: 0.0.40
codegen_flags: <defaults>
</compile_context>

<pallas_src>
import math

import jax
import jax.numpy as jnp
from jax.experimental import pallas as pl
from jax.experimental.pallas import tpu as pltpu


# ----------------------------------------------------------------------------
# Fused kernel: encoder layer + CLS MLP head, one batch element per grid step.
# ----------------------------------------------------------------------------
def fused_encoder_head_kernel(
        x_ref, mask_ref, drop_ref,
        wq_ref, bq_ref, wk_ref, bk_ref, wv_ref, bv_ref, wo_ref, bo_ref,
        ln1_g_ref, ln1_b_ref,
        w1_ref, c1_ref, w2_ref, c2_ref,
        ln2_g_ref, ln2_b_ref,
        hw1_ref, hb1_ref, hw2_ref, hb2_ref,
        out_ref):
    x = x_ref[0].astype(jnp.float32)          # (S, H)
    mask = mask_ref[0].astype(jnp.float32)    # (1, S)

    def dense(h, w_ref, b_ref):
        # bf16 MXU operands, f32 accumulation; bias add in f32 on the VPU.
        return (jnp.dot(h.astype(jnp.bfloat16), w_ref[...],
                        preferred_element_type=jnp.float32)
                + b_ref[...])

    q = dense(x, wq_ref, bq_ref)              # (S, H)
    k = dense(x, wk_ref, bk_ref)              # (S, H)
    v = dense(x, wv_ref, bv_ref)              # (S, H)

    scale = 1.0 / math.sqrt(x.shape[-1])
    # Contract last dim of q against last dim of k directly (no explicit transpose).
    scores = jax.lax.dot_general(
        q.astype(jnp.bfloat16), k.astype(jnp.bfloat16),
        dimension_numbers=(((1,), (1,)), ((), ())),
        preferred_element_type=jnp.float32) * scale          # (S, S)
    scores = scores + (1.0 - mask) * (-1e9)                   # mask padded keys
    scores = scores - jnp.max(scores, axis=-1, keepdims=True)
    p = jnp.exp(scores)
    attn = p / jnp.sum(p, axis=-1, keepdims=True)             # f32 softmax
    ctx = jnp.dot(attn.astype(jnp.bfloat16), v.astype(jnp.bfloat16),
                  preferred_element_type=jnp.float32)          # (S, H)
    attn_out = dense(ctx, wo_ref, bo_ref)

    def layernorm(h, g_ref, b_ref):
        mu = jnp.mean(h, axis=-1, keepdims=True)
        var = jnp.mean((h - mu) ** 2, axis=-1, keepdims=True)
        return (h - mu) * jax.lax.rsqrt(var + 1e-5) * g_ref[...] + b_ref[...]

    h = layernorm(x + attn_out, ln1_g_ref, ln1_b_ref)          # post-LN
    ffn = dense(jax.nn.gelu(dense(h, w1_ref, c1_ref)), w2_ref, c2_ref)
    h_out = layernorm(h + ffn, ln2_g_ref, ln2_b_ref)           # (S, H)

    # ---- fused MLP head on the CLS row only (no (S,H) HBM writeback) ----
    cls = h_out[0:1, :]                                        # (1, H)
    h1 = (jnp.dot(cls.astype(jnp.bfloat16), hw1_ref[...],
                  preferred_element_type=jnp.float32) + hb1_ref[...])
    h1 = jnp.maximum(h1, 0.0)                                  # ReLU
    h1 = h1 * drop_ref[0]                                      # inverted-dropout keep/scale mask
    logits = (jnp.dot(h1.astype(jnp.bfloat16), hw2_ref[...],
                      preferred_element_type=jnp.float32) + hb2_ref[...])
    out_ref[0] = logits.astype(out_ref.dtype)                  # (1, C)


# ----------------------------------------------------------------------------
# Wrapper: embedding lookup (glue), dropout mask generation (glue), pallas_call.
# ----------------------------------------------------------------------------
def transformer_mlp_forward(input_ids, attention_mask, params, *,
                            dropout_p=0.3, training=True, dropout_key=None):
    B, S = input_ids.shape
    word_emb = params["word_emb"]
    pos_emb = params["pos_emb"]
    H = word_emb.shape[1]
    enc = params["encoder"]
    head = params["head"]
    F = enc["w1"].shape[1]
    HID = head["w1"].shape[1]
    C = head["w2"].shape[1]

    # glue: embedding lookup
    embeds = (jnp.take(word_emb, input_ids, axis=0)
              + pos_emb[None, :S, :]).astype(jnp.float32)              # (B, S, H)
    mask3 = attention_mask.astype(jnp.float32).reshape(B, 1, S)        # (B, 1, S)

    # glue: dropout keep/scale mask computed host-side (deterministic via PRNGKey).
    # TODO(synk): on-chip pltpu.prng_* would avoid this HBM traffic but has no
    # CPU/interpret lowering, so the mask is generated outside the kernel.
    if training and dropout_p > 0.0:
        if dropout_key is None:
            dropout_key = jax.random.PRNGKey(0)
        keep = jax.random.bernoulli(dropout_key, 1.0 - dropout_p, (B, 1, HID))
        drop = keep.astype(jnp.float32) / (1.0 - dropout_p)
    else:
        drop = jnp.ones((B, 1, HID), jnp.float32)

    def full2(shape):
        return pl.BlockSpec(shape, lambda b: (0, 0))

    in_specs = [
        pl.BlockSpec((1, S, H), lambda b: (b, 0, 0)),      # embeds
        pl.BlockSpec((1, 1, S), lambda b: (b, 0, 0)),      # attention mask
        pl.BlockSpec((1, 1, HID), lambda b: (b, 0, 0)),    # dropout keep/scale
        full2((H, H)), full2((1, H)),                      # wq, bq
        full2((H, H)), full2((1, H)),                      # wk, bk
        full2((H, H)), full2((1, H)),                      # wv, bv
        full2((H, H)), full2((1, H)),                      # wo, bo
        full2((1, H)), full2((1, H)),                      # ln1 gamma, beta
        full2((H, F)), full2((1, F)),                      # ffn w1, c1
        full2((F, H)), full2((1, H)),                      # ffn w2, c2
        full2((1, H)), full2((1, H)),                      # ln2 gamma, beta
        full2((H, HID)), full2((1, HID)),                  # head w1, b1
        full2((HID, C)), full2((1, C)),                    # head w2, b2
    ]

    weight_args = (
        enc["wq"], enc["bq"], enc["wk"], enc["bk"], enc["wv"], enc["bv"],
        enc["wo"], enc["bo"], enc["ln1_g"], enc["ln1_b"],
        enc["w1"], enc["c1"], enc["w2"], enc["c2"], enc["ln2_g"], enc["ln2_b"],
        head["w1"], head["b1"], head["w2"], head["b2"],
    )

    # Explicit VMEM budget from the actual block footprint (double-buffered
    # per-batch blocks + grid-invariant weights) plus headroom for temporaries.
    per_step_elems = S * H + S + HID + C
    weight_bytes = sum(int(w.size) * w.dtype.itemsize for w in weight_args)
    vmem_limit = int(min(max(2 * (4 * per_step_elems) + 2 * weight_bytes + (8 << 20),
                             16 << 20), 100 << 20))

    out = pl.pallas_call(
        fused_encoder_head_kernel,
        out_shape=jax.ShapeDtypeStruct((B, 1, C), jnp.float32),
        grid=(B,),
        in_specs=in_specs,
        out_specs=pl.BlockSpec((1, 1, C), lambda b: (b, 0, 0)),
        compiler_params=pltpu.CompilerParams(
            dimension_semantics=("parallel",),       # batch elements independent
            vmem_limit_bytes=vmem_limit),
    )(embeds, mask3, drop, *weight_args)

    return out[:, 0, :]                                        # (B, C) logits


# ----------------------------------------------------------------------------
# Parameter init: matmul weights in bf16 (MXU), biases / LN params in f32,
# weights stored as (in_features, out_features) so the kernel does x @ W + b.
# ----------------------------------------------------------------------------
def init_params(key, vocab, S, H, F, HID, C):
    keys = jax.random.split(key, 10)

    def nw(k, shape, s=0.02):
        return (jax.random.normal(k, shape, jnp.float32) * s).astype(jnp.bfloat16)

    def zeros2(d):
        return jnp.zeros((1, d), jnp.float32)

    def ones2(d):
        return jnp.ones((1, d), jnp.float32)

    return {
        "word_emb": jax.random.normal(keys[0], (vocab, H), jnp.float32) * 0.02,
        "pos_emb": jax.random.normal(keys[1], (S, H), jnp.float32) * 0.02,
        "encoder": {
            "wq": nw(keys[2], (H, H)), "bq": zeros2(H),
            "wk": nw(keys[3], (H, H)), "bk": zeros2(H),
            "wv": nw(keys[4], (H, H)), "bv": zeros2(H),
            "wo": nw(keys[5], (H, H)), "bo": zeros2(H),
            "ln1_g": ones2(H), "ln1_b": zeros2(H),
            "w1": nw(keys[6], (H, F)), "c1": zeros2(F),
            "w2": nw(keys[7], (F, H)), "c2": zeros2(H),
            "ln2_g": ones2(H), "ln2_b": zeros2(H),
        },
        "head": {
            "w1": nw(keys[8], (H, HID), 0.05), "b1": zeros2(HID),
            "w2": nw(keys[9], (HID, C), 0.05), "b2": zeros2(C),
        },
    }


if __name__ == "__main__":
    B, S, H, F, HID, C, VOCAB = 2, 8, 32, 64, 128, 4, 100

    key = jax.random.PRNGKey(0)
    k_params, k_ids, k_drop = jax.random.split(key, 3)
    params = init_params(k_params, VOCAB, S, H, F, HID, C)

    input_ids = jax.random.randint(k_ids, (B, S), 0, VOCAB, dtype=jnp.int32)
    # sequence 1 has 2 padding tokens at the end
    attention_mask = jnp.array([[1] * S, [1] * (S - 2) + [0] * 2], dtype=jnp.int32)

    logits = transformer_mlp_forward(input_ids, attention_mask, params,
                                     dropout_p=0.3, training=True,
                                     dropout_key=k_drop)
    logits = jax.block_until_ready(logits)
    assert logits.shape == (B, C) and logits.dtype == jnp.float32
    print("KERNEL_OK")
</pallas_src>

<mosaic_0001>
module attributes {stable_mosaic.version = 11 : i64} {
  func.func @fused_encoder_head_kernel(%arg0: i32, %arg1: memref<1x8x32xf32, #tpu.memory_space<vmem>>, %arg2: memref<1x1x8xf32, #tpu.memory_space<vmem>>, %arg3: memref<1x1x128xf32, #tpu.memory_space<vmem>>, %arg4: memref<32x32xbf16, #tpu.memory_space<vmem>>, %arg5: memref<1x32xf32, #tpu.memory_space<vmem>>, %arg6: memref<32x32xbf16, #tpu.memory_space<vmem>>, %arg7: memref<1x32xf32, #tpu.memory_space<vmem>>, %arg8: memref<32x32xbf16, #tpu.memory_space<vmem>>, %arg9: memref<1x32xf32, #tpu.memory_space<vmem>>, %arg10: memref<32x32xbf16, #tpu.memory_space<vmem>>, %arg11: memref<1x32xf32, #tpu.memory_space<vmem>>, %arg12: memref<1x32xf32, #tpu.memory_space<vmem>>, %arg13: memref<1x32xf32, #tpu.memory_space<vmem>>, %arg14: memref<32x64xbf16, #tpu.memory_space<vmem>>, %arg15: memref<1x64xf32, #tpu.memory_space<vmem>>, %arg16: memref<64x32xbf16, #tpu.memory_space<vmem>>, %arg17: memref<1x32xf32, #tpu.memory_space<vmem>>, %arg18: memref<1x32xf32, #tpu.memory_space<vmem>>, %arg19: memref<1x32xf32, #tpu.memory_space<vmem>>, %arg20: memref<32x128xbf16, #tpu.memory_space<vmem>>, %arg21: memref<1x128xf32, #tpu.memory_space<vmem>>, %arg22: memref<128x4xbf16, #tpu.memory_space<vmem>>, %arg23: memref<1x4xf32, #tpu.memory_space<vmem>>, %arg24: memref<1x1x4xf32, #tpu.memory_space<vmem>>) attributes {dimension_semantics = [#tpu.dimension_semantics<parallel>], iteration_bounds = array<i64: 2>, scalar_prefetch = 0 : i64, scratch_operands = 0 : i64, tpu.core_type = #tpu.core_type<tc>, window_params = [{transform_indices = @transform_0, window_bounds = array<i64: 1, 8, 32>}, {transform_indices = @transform_1, window_bounds = array<i64: 1, 1, 8>}, {transform_indices = @transform_2, window_bounds = array<i64: 1, 1, 128>}, {pipeline_mode = #tpu.pipeline_mode<synchronous>, transform_indices = @transform_3, window_bounds = array<i64: 32, 32>}, {pipeline_mode = #tpu.pipeline_mode<synchronous>, transform_indices = @transform_4, window_bounds = array<i64: 1, 32>}, {pipeline_mode = #tpu.pipeline_mode<synchronous>, transform_indices = @transform_5, window_bounds = array<i64: 32, 32>}, {pipeline_mode = #tpu.pipeline_mode<synchronous>, transform_indices = @transform_6, window_bounds = array<i64: 1, 32>}, {pipeline_mode = #tpu.pipeline_mode<synchronous>, transform_indices = @transform_7, window_bounds = array<i64: 32, 32>}, {pipeline_mode = #tpu.pipeline_mode<synchronous>, transform_indices = @transform_8, window_bounds = array<i64: 1, 32>}, {pipeline_mode = #tpu.pipeline_mode<synchronous>, transform_indices = @transform_9, window_bounds = array<i64: 32, 32>}, {pipeline_mode = #tpu.pipeline_mode<synchronous>, transform_indices = @transform_10, window_bounds = array<i64: 1, 32>}, {pipeline_mode = #tpu.pipeline_mode<synchronous>, transform_indices = @transform_11, window_bounds = array<i64: 1, 32>}, {pipeline_mode = #tpu.pipeline_mode<synchronous>, transform_indices = @transform_12, window_bounds = array<i64: 1, 32>}, {pipeline_mode = #tpu.pipeline_mode<synchronous>, transform_indices = @transform_13, window_bounds = array<i64: 32, 64>}, {pipeline_mode = #tpu.pipeline_mode<synchronous>, transform_indices = @transform_14, window_bounds = array<i64: 1, 64>}, {pipeline_mode = #tpu.pipeline_mode<synchronous>, transform_indices = @transform_15, window_bounds = array<i64: 64, 32>}, {pipeline_mode = #tpu.pipeline_mode<synchronous>, transform_indices = @transform_16, window_bounds = array<i64: 1, 32>}, {pipeline_mode = #tpu.pipeline_mode<synchronous>, transform_indices = @transform_17, window_bounds = array<i64: 1, 32>}, {pipeline_mode = #tpu.pipeline_mode<synchronous>, transform_indices = @transform_18, window_bounds = array<i64: 1, 32>}, {pipeline_mode = #tpu.pipeline_mode<synchronous>, transform_indices = @transform_19, window_bounds = array<i64: 32, 128>}, {pipeline_mode = #tpu.pipeline_mode<synchronous>, transform_indices = @transform_20, window_bounds = array<i64: 1, 128>}, {pipeline_mode = #tpu.pipeline_mode<synchronous>, transform_indices = @transform_21, window_bounds = array<i64: 128, 4>}, {pipeline_mode = #tpu.pipeline_mode<synchronous>, transform_indices = @transform_22, window_bounds = array<i64: 1, 4>}, {transform_indices = @transform_23, window_bounds = array<i64: 1, 1, 4>}]} {
    %c0 = arith.constant 0 : index
    %c0_0 = arith.constant 0 : index
    %c0_1 = arith.constant 0 : index
    %0 = vector.load %arg1[%c0, %c0_0, %c0_1] : memref<1x8x32xf32, #tpu.memory_space<vmem>>, vector<1x8x32xf32>
    %1 = vector.shape_cast %0 : vector<1x8x32xf32> to vector<8x32xf32>
    %c0_2 = arith.constant 0 : index
    %c0_3 = arith.constant 0 : index
    %c0_4 = arith.constant 0 : index
    %2 = vector.load %arg2[%c0_2, %c0_3, %c0_4] : memref<1x1x8xf32, #tpu.memory_space<vmem>>, vector<1x1x8xf32>
    %3 = vector.shape_cast %2 : vector<1x1x8xf32> to vector<1x8xf32>
    %4 = arith.truncf %1 : vector<8x32xf32> to vector<8x32xbf16>
    %c0_5 = arith.constant 0 : index
    %c0_6 = arith.constant 0 : index
    %5 = vector.load %arg4[%c0_5, %c0_6] : memref<32x32xbf16, #tpu.memory_space<vmem>>, vector<32x32xbf16>
    %cst = arith.constant dense<0.000000e+00> : vector<8x32xf32>
    %6 = tpu.matmul %4, %5, %cst {dimension_numbers = #tpu.dot_dimension_numbers<[1], [0], [0], [1], [0, 0, 1, 1], [], []>} : vector<8x32xbf16>, vector<32x32xbf16>, vector<8x32xf32> -> vector<8x32xf32>
    %c0_7 = arith.constant 0 : index
    %c0_8 = arith.constant 0 : index
    %7 = vector.load %arg5[%c0_7, %c0_8] : memref<1x32xf32, #tpu.memory_space<vmem>>, vector<1x32xf32>
    %8 = vector.broadcast %7 : vector<1x32xf32> to vector<8x32xf32>
    %9 = arith.addf %6, %8 : vector<8x32xf32>
    %10 = arith.truncf %1 : vector<8x32xf32> to vector<8x32xbf16>
    %c0_9 = arith.constant 0 : index
    %c0_10 = arith.constant 0 : index
    %11 = vector.load %arg6[%c0_9, %c0_10] : memref<32x32xbf16, #tpu.memory_space<vmem>>, vector<32x32xbf16>
    %cst_11 = arith.constant dense<0.000000e+00> : vector<8x32xf32>
    %12 = tpu.matmul %10, %11, %cst_11 {dimension_numbers = #tpu.dot_dimension_numbers<[1], [0], [0], [1], [0, 0, 1, 1], [], []>} : vector<8x32xbf16>, vector<32x32xbf16>, vector<8x32xf32> -> vector<8x32xf32>
    %c0_12 = arith.constant 0 : index
    %c0_13 = arith.constant 0 : index
    %13 = vector.load %arg7[%c0_12, %c0_13] : memref<1x32xf32, #tpu.memory_space<vmem>>, vector<1x32xf32>
    %14 = vector.broadcast %13 : vector<1x32xf32> to vector<8x32xf32>
    %15 = arith.addf %12, %14 : vector<8x32xf32>
    %16 = arith.truncf %1 : vector<8x32xf32> to vector<8x32xbf16>
    %c0_14 = arith.constant 0 : index
    %c0_15 = arith.constant 0 : index
    %17 = vector.load %arg8[%c0_14, %c0_15] : memref<32x32xbf16, #tpu.memory_space<vmem>>, vector<32x32xbf16>
    %cst_16 = arith.constant dense<0.000000e+00> : vector<8x32xf32>
    %18 = tpu.matmul %16, %17, %cst_16 {dimension_numbers = #tpu.dot_dimension_numbers<[1], [0], [0], [1], [0, 0, 1, 1], [], []>} : vector<8x32xbf16>, vector<32x32xbf16>, vector<8x32xf32> -> vector<8x32xf32>
    %c0_17 = arith.constant 0 : index
    %c0_18 = arith.constant 0 : index
    %19 = vector.load %arg9[%c0_17, %c0_18] : memref<1x32xf32, #tpu.memory_space<vmem>>, vector<1x32xf32>
    %20 = vector.broadcast %19 : vector<1x32xf32> to vector<8x32xf32>
    %21 = arith.addf %18, %20 : vector<8x32xf32>
    %22 = arith.truncf %9 : vector<8x32xf32> to vector<8x32xbf16>
    %23 = arith.truncf %15 : vector<8x32xf32> to vector<8x32xbf16>
    %cst_19 = arith.constant dense<0.000000e+00> : vector<8x8xf32>
    %24 = tpu.matmul %22, %23, %cst_19 {dimension_numbers = #tpu.dot_dimension_numbers<[1], [1], [0], [0], [0, 0, 1, 0], [], []>} : vector<8x32xbf16>, vector<8x32xbf16>, vector<8x8xf32> -> vector<8x8xf32>
    %cst_20 = arith.constant 0.176776692 : f32
    %25 = vector.broadcast %cst_20 : f32 to vector<8x8xf32>
    %26 = arith.mulf %24, %25 : vector<8x8xf32>
    %cst_21 = arith.constant 1.000000e+00 : f32
    %27 = vector.broadcast %cst_21 : f32 to vector<1x8xf32>
    %28 = arith.subf %27, %3 : vector<1x8xf32>
    %cst_22 = arith.constant -1.000000e+09 : f32
    %29 = vector.broadcast %cst_22 : f32 to vector<1x8xf32>
    %30 = arith.mulf %28, %29 : vector<1x8xf32>
    %31 = vector.broadcast %30 : vector<1x8xf32> to vector<8x8xf32>
    %32 = arith.addf %26, %31 : vector<8x8xf32>
    %cst_23 = arith.constant dense<0xFF800000> : vector<8xf32>
    %33 = vector.multi_reduction <maximumf>, %32, %cst_23 [1] : vector<8x8xf32> to vector<8xf32>
    %34 = vector.shape_cast %33 : vector<8xf32> to vector<8x1xf32>
    %35 = vector.broadcast %34 : vector<8x1xf32> to vector<8x8xf32>
    %36 = arith.subf %32, %35 : vector<8x8xf32>
    %37 = math.exp %36 : vector<8x8xf32>
    %cst_24 = arith.constant dense<0.000000e+00> : vector<8xf32>
    %38 = vector.multi_reduction <add>, %37, %cst_24 [1] : vector<8x8xf32> to vector<8xf32>
    %39 = vector.shape_cast %38 : vector<8xf32> to vector<8x1xf32>
    %40 = vector.broadcast %39 : vector<8x1xf32> to vector<8x8xf32>
    %41 = arith.divf %37, %40 : vector<8x8xf32>
    %42 = arith.truncf %41 : vector<8x8xf32> to vector<8x8xbf16>
    %43 = arith.truncf %21 : vector<8x32xf32> to vector<8x32xbf16>
    %cst_25 = arith.constant dense<0.000000e+00> : vector<8x32xf32>
    %44 = tpu.matmul %42, %43, %cst_25 {dimension_numbers = #tpu.dot_dimension_numbers<[1], [0], [0], [1], [0, 0, 1, 1], [], []>} : vector<8x8xbf16>, vector<8x32xbf16>, vector<8x32xf32> -> vector<8x32xf32>
    %45 = arith.truncf %44 : vector<8x32xf32> to vector<8x32xbf16>
    %c0_26 = arith.constant 0 : index
    %c0_27 = arith.constant 0 : index
    %46 = vector.load %arg10[%c0_26, %c0_27] : memref<32x32xbf16, #tpu.memory_space<vmem>>, vector<32x32xbf16>
    %cst_28 = arith.constant dense<0.000000e+00> : vector<8x32xf32>
    %47 = tpu.matmul %45, %46, %cst_28 {dimension_numbers = #tpu.dot_dimension_numbers<[1], [0], [0], [1], [0, 0, 1, 1], [], []>} : vector<8x32xbf16>, vector<32x32xbf16>, vector<8x32xf32> -> vector<8x32xf32>
    %c0_29 = arith.constant 0 : index
    %c0_30 = arith.constant 0 : index
    %48 = vector.load %arg11[%c0_29, %c0_30] : memref<1x32xf32, #tpu.memory_space<vmem>>, vector<1x32xf32>
    %49 = vector.broadcast %48 : vector<1x32xf32> to vector<8x32xf32>
    %50 = arith.addf %47, %49 : vector<8x32xf32>
    %51 = arith.addf %1, %50 : vector<8x32xf32>
    %cst_31 = arith.constant dense<0.000000e+00> : vector<8xf32>
    %52 = vector.multi_reduction <add>, %51, %cst_31 [1] : vector<8x32xf32> to vector<8xf32>
    %53 = vector.shape_cast %52 : vector<8xf32> to vector<8x1xf32>
    %cst_32 = arith.constant 3.200000e+01 : f32
    %54 = vector.broadcast %cst_32 : f32 to vector<8x1xf32>
    %55 = arith.divf %53, %54 : vector<8x1xf32>
    %56 = vector.broadcast %55 : vector<8x1xf32> to vector<8x32xf32>
    %57 = arith.subf %51, %56 : vector<8x32xf32>
    %58 = arith.mulf %57, %57 : vector<8x32xf32>
    %cst_33 = arith.constant dense<0.000000e+00> : vector<8xf32>
    %59 = vector.multi_reduction <add>, %58, %cst_33 [1] : vector<8x32xf32> to vector<8xf32>
    %60 = vector.shape_cast %59 : vector<8xf32> to vector<8x1xf32>
    %cst_34 = arith.constant 3.200000e+01 : f32
    %61 = vector.broadcast %cst_34 : f32 to vector<8x1xf32>
    %62 = arith.divf %60, %61 : vector<8x1xf32>
    %63 = vector.broadcast %55 : vector<8x1xf32> to vector<8x32xf32>
    %64 = arith.subf %51, %63 : vector<8x32xf32>
    %cst_35 = arith.constant 9.99999974E-6 : f32
    %65 = vector.broadcast %cst_35 : f32 to vector<8x1xf32>
    %66 = arith.addf %62, %65 : vector<8x1xf32>
    %67 = math.rsqrt %66 : vector<8x1xf32>
    %68 = vector.broadcast %67 : vector<8x1xf32> to vector<8x32xf32>
    %69 = arith.mulf %64, %68 : vector<8x32xf32>
    %c0_36 = arith.constant 0 : index
    %c0_37 = arith.constant 0 : index
    %70 = vector.load %arg12[%c0_36, %c0_37] : memref<1x32xf32, #tpu.memory_space<vmem>>, vector<1x32xf32>
    %71 = vector.broadcast %70 : vector<1x32xf32> to vector<8x32xf32>
    %72 = arith.mulf %69, %71 : vector<8x32xf32>
    %c0_38 = arith.constant 0 : index
    %c0_39 = arith.constant 0 : index
    %73 = vector.load %arg13[%c0_38, %c0_39] : memref<1x32xf32, #tpu.memory_space<vmem>>, vector<1x32xf32>
    %74 = vector.broadcast %73 : vector<1x32xf32> to vector<8x32xf32>
    %75 = arith.addf %72, %74 : vector<8x32xf32>
    %76 = arith.truncf %75 : vector<8x32xf32> to vector<8x32xbf16>
    %c0_40 = arith.constant 0 : index
    %c0_41 = arith.constant 0 : index
    %77 = vector.load %arg14[%c0_40, %c0_41] : memref<32x64xbf16, #tpu.memory_space<vmem>>, vector<32x64xbf16>
    %cst_42 = arith.constant dense<0.000000e+00> : vector<8x64xf32>
    %78 = tpu.matmul %76, %77, %cst_42 {dimension_numbers = #tpu.dot_dimension_numbers<[1], [0], [0], [1], [0, 0, 1, 1], [], []>} : vector<8x32xbf16>, vector<32x64xbf16>, vector<8x64xf32> -> vector<8x64xf32>
    %c0_43 = arith.constant 0 : index
    %c0_44 = arith.constant 0 : index
    %79 = vector.load %arg15[%c0_43, %c0_44] : memref<1x64xf32, #tpu.memory_space<vmem>>, vector<1x64xf32>
    %80 = vector.broadcast %79 : vector<1x64xf32> to vector<8x64xf32>
    %81 = arith.addf %78, %80 : vector<8x64xf32>
    %82 = arith.mulf %81, %81 : vector<8x64xf32>
    %83 = arith.mulf %81, %82 : vector<8x64xf32>
    %cst_45 = arith.constant 4.471500e-02 : f32
    %84 = vector.broadcast %cst_45 : f32 to vector<8x64xf32>
    %85 = arith.mulf %84, %83 : vector<8x64xf32>
    %86 = arith.addf %81, %85 : vector<8x64xf32>
    %cst_46 = arith.constant 0.797884583 : f32
    %87 = vector.broadcast %cst_46 : f32 to vector<8x64xf32>
    %88 = arith.mulf %87, %86 : vector<8x64xf32>
    %89 = math.tanh %88 : vector<8x64xf32>
    %cst_47 = arith.constant 1.000000e+00 : f32
    %90 = vector.broadcast %cst_47 : f32 to vector<8x64xf32>
    %91 = arith.addf %90, %89 : vector<8x64xf32>
    %cst_48 = arith.constant 5.000000e-01 : f32
    %92 = vector.broadcast %cst_48 : f32 to vector<8x64xf32>
    %93 = arith.mulf %92, %91 : vector<8x64xf32>
    %94 = arith.mulf %81, %93 : vector<8x64xf32>
    %95 = arith.truncf %94 : vector<8x64xf32> to vector<8x64xbf16>
    %c0_49 = arith.constant 0 : index
    %c0_50 = arith.constant 0 : index
    %96 = vector.load %arg16[%c0_49, %c0_50] : memref<64x32xbf16, #tpu.memory_space<vmem>>, vector<64x32xbf16>
    %cst_51 = arith.constant dense<0.000000e+00> : vector<8x32xf32>
    %97 = tpu.matmul %95, %96, %cst_51 {dimension_numbers = #tpu.dot_dimension_numbers<[1], [0], [0], [1], [0, 0, 1, 1], [], []>} : vector<8x64xbf16>, vector<64x32xbf16>, vector<8x32xf32> -> vector<8x32xf32>
    %c0_52 = arith.constant 0 : index
    %c0_53 = arith.constant 0 : index
    %98 = vector.load %arg17[%c0_52, %c0_53] : memref<1x32xf32, #tpu.memory_space<vmem>>, vector<1x32xf32>
    %99 = vector.broadcast %98 : vector<1x32xf32> to vector<8x32xf32>
    %100 = arith.addf %97, %99 : vector<8x32xf32>
    %101 = arith.addf %75, %100 : vector<8x32xf32>
    %cst_54 = arith.constant dense<0.000000e+00> : vector<8xf32>
    %102 = vector.multi_reduction <add>, %101, %cst_54 [1] : vector<8x32xf32> to vector<8xf32>
    %103 = vector.shape_cast %102 : vector<8xf32> to vector<8x1xf32>
    %cst_55 = arith.constant 3.200000e+01 : f32
    %104 = vector.broadcast %cst_55 : f32 to vector<8x1xf32>
    %105 = arith.divf %103, %104 : vector<8x1xf32>
    %106 = vector.broadcast %105 : vector<8x1xf32> to vector<8x32xf32>
    %107 = arith.subf %101, %106 : vector<8x32xf32>
    %108 = arith.mulf %107, %107 : vector<8x32xf32>
    %cst_56 = arith.constant dense<0.000000e+00> : vector<8xf32>
    %109 = vector.multi_reduction <add>, %108, %cst_56 [1] : vector<8x32xf32> to vector<8xf32>
    %110 = vector.shape_cast %109 : vector<8xf32> to vector<8x1xf32>
    %cst_57 = arith.constant 3.200000e+01 : f32
    %111 = vector.broadcast %cst_57 : f32 to vector<8x1xf32>
    %112 = arith.divf %110, %111 : vector<8x1xf32>
    %113 = vector.broadcast %105 : vector<8x1xf32> to vector<8x32xf32>
    %114 = arith.subf %101, %113 : vector<8x32xf32>
    %cst_58 = arith.constant 9.99999974E-6 : f32
    %115 = vector.broadcast %cst_58 : f32 to vector<8x1xf32>
    %116 = arith.addf %112, %115 : vector<8x1xf32>
    %117 = math.rsqrt %116 : vector<8x1xf32>
    %118 = vector.broadcast %117 : vector<8x1xf32> to vector<8x32xf32>
    %119 = arith.mulf %114, %118 : vector<8x32xf32>
    %c0_59 = arith.constant 0 : index
    %c0_60 = arith.constant 0 : index
    %120 = vector.load %arg18[%c0_59, %c0_60] : memref<1x32xf32, #tpu.memory_space<vmem>>, vector<1x32xf32>
    %121 = vector.broadcast %120 : vector<1x32xf32> to vector<8x32xf32>
    %122 = arith.mulf %119, %121 : vector<8x32xf32>
    %c0_61 = arith.constant 0 : index
    %c0_62 = arith.constant 0 : index
    %123 = vector.load %arg19[%c0_61, %c0_62] : memref<1x32xf32, #tpu.memory_space<vmem>>, vector<1x32xf32>
    %124 = vector.broadcast %123 : vector<1x32xf32> to vector<8x32xf32>
    %125 = arith.addf %122, %124 : vector<8x32xf32>
    %126 = vector.extract_strided_slice %125 {offsets = [0, 0], sizes = [1, 32], strides = [1, 1]} : vector<8x32xf32> to vector<1x32xf32>
    %127 = arith.truncf %126 : vector<1x32xf32> to vector<1x32xbf16>
    %c0_63 = arith.constant 0 : index
    %c0_64 = arith.constant 0 : index
    %128 = vector.load %arg20[%c0_63, %c0_64] : memref<32x128xbf16, #tpu.memory_space<vmem>>, vector<32x128xbf16>
    %cst_65 = arith.constant dense<0.000000e+00> : vector<1x128xf32>
    %129 = tpu.matmul %127, %128, %cst_65 {dimension_numbers = #tpu.dot_dimension_numbers<[1], [0], [0], [1], [0, 0, 1, 1], [], []>} : vector<1x32xbf16>, vector<32x128xbf16>, vector<1x128xf32> -> vector<1x128xf32>
    %c0_66 = arith.constant 0 : index
    %c0_67 = arith.constant 0 : index
    %130 = vector.load %arg21[%c0_66, %c0_67] : memref<1x128xf32, #tpu.memory_space<vmem>>, vector<1x128xf32>
    %131 = arith.addf %129, %130 : vector<1x128xf32>
    %cst_68 = arith.constant 0.000000e+00 : f32
    %132 = vector.broadcast %cst_68 : f32 to vector<1x128xf32>
    %133 = arith.maximumf %131, %132 : vector<1x128xf32>
    %c0_69 = arith.constant 0 : index
    %c0_70 = arith.constant 0 : index
    %c0_71 = arith.constant 0 : index
    %134 = vector.load %arg3[%c0_69, %c0_70, %c0_71] : memref<1x1x128xf32, #tpu.memory_space<vmem>>, vector<1x1x128xf32>
    %135 = vector.shape_cast %134 : vector<1x1x128xf32> to vector<1x128xf32>
    %136 = arith.mulf %133, %135 : vector<1x128xf32>
    %137 = arith.truncf %136 : vector<1x128xf32> to vector<1x128xbf16>
    %c0_72 = arith.constant 0 : index
    %c0_73 = arith.constant 0 : index
    %138 = vector.load %arg22[%c0_72, %c0_73] : memref<128x4xbf16, #tpu.memory_space<vmem>>, vector<128x4xbf16>
    %cst_74 = arith.constant dense<0.000000e+00> : vector<1x4xf32>
    %139 = tpu.matmul %137, %138, %cst_74 {dimension_numbers = #tpu.dot_dimension_numbers<[1], [0], [0], [1], [0, 0, 1, 1], [], []>} : vector<1x128xbf16>, vector<128x4xbf16>, vector<1x4xf32> -> vector<1x4xf32>
    %c0_75 = arith.constant 0 : index
    %c0_76 = arith.constant 0 : index
    %140 = vector.load %arg23[%c0_75, %c0_76] : memref<1x4xf32, #tpu.memory_space<vmem>>, vector<1x4xf32>
    %141 = arith.addf %139, %140 : vector<1x4xf32>
    %c0_77 = arith.constant 0 : index
    %c0_78 = arith.constant 0 : index
    %c0_79 = arith.constant 0 : index
    %142 = vector.load %arg24[%c0_77, %c0_78, %c0_79] : memref<1x1x4xf32, #tpu.memory_space<vmem>>, vector<1x1x4xf32>
    %143 = vector.shape_cast %142 : vector<1x1x4xf32> to vector<1x4xf32>
    %144 = vector.shape_cast %141 : vector<1x4xf32> to vector<1x1x4xf32>
    tpu.vector_store %arg24[%c0_77, %c0_78, %c0_79], %144 {strides = array<i32>} : memref<1x1x4xf32, #tpu.memory_space<vmem>>, vector<1x1x4xf32>,
    return
  }
  func.func @transform_0(%arg0: i32) -> (i32, i32, i32) {
    %c0_i32 = arith.constant 0 : i32
    %c0_i32_0 = arith.constant 0 : i32
    %c0_i32_1 = arith.constant 0 : i32
    return %arg0, %c0_i32, %c0_i32_0 : i32, i32, i32
  }
  func.func @transform_1(%arg0: i32) -> (i32, i32, i32) {
    %c0_i32 = arith.constant 0 : i32
    %c0_i32_0 = arith.constant 0 : i32
    %c0_i32_1 = arith.constant 0 : i32
    return %arg0, %c0_i32, %c0_i32_0 : i32, i32, i32
  }
  func.func @transform_2(%arg0: i32) -> (i32, i32, i32) {
    %c0_i32 = arith.constant 0 : i32
    %c0_i32_0 = arith.constant 0 : i32
    %c0_i32_1 = arith.constant 0 : i32
    return %arg0, %c0_i32, %c0_i32_0 : i32, i32, i32
  }
  func.func @transform_3(%arg0: i32) -> (i32, i32) {
    %c0_i32 = arith.constant 0 : i32
    %c0_i32_0 = arith.constant 0 : i32
    %c0_i32_1 = arith.constant 0 : i32
    return %c0_i32, %c0_i32_0 : i32, i32
  }
  func.func @transform_4(%arg0: i32) -> (i32, i32) {
    %c0_i32 = arith.constant 0 : i32
    %c0_i32_0 = arith.constant 0 : i32
    %c0_i32_1 = arith.constant 0 : i32
    return %c0_i32, %c0_i32_0 : i32, i32
  }
  func.func @transform_5(%arg0: i32) -> (i32, i32) {
    %c0_i32 = arith.constant 0 : i32
    %c0_i32_0 = arith.constant 0 : i32
    %c0_i32_1 = arith.constant 0 : i32
    return %c0_i32, %c0_i32_0 : i32, i32
  }
  func.func @transform_6(%arg0: i32) -> (i32, i32) {
    %c0_i32 = arith.constant 0 : i32
    %c0_i32_0 = arith.constant 0 : i32
    %c0_i32_1 = arith.constant 0 : i32
    return %c0_i32, %c0_i32_0 : i32, i32
  }
  func.func @transform_7(%arg0: i32) -> (i32, i32) {
    %c0_i32 = arith.constant 0 : i32
    %c0_i32_0 = arith.constant 0 : i32
    %c0_i32_1 = arith.constant 0 : i32
    return %c0_i32, %c0_i32_0 : i32, i32
  }
  func.func @transform_8(%arg0: i32) -> (i32, i32) {
    %c0_i32 = arith.constant 0 : i32
    %c0_i32_0 = arith.constant 0 : i32
    %c0_i32_1 = arith.constant 0 : i32
    return %c0_i32, %c0_i32_0 : i32, i32
  }
  func.func @transform_9(%arg0: i32) -> (i32, i32) {
    %c0_i32 = arith.constant 0 : i32
    %c0_i32_0 = arith.constant 0 : i32
    %c0_i32_1 = arith.constant 0 : i32
    return %c0_i32, %c0_i32_0 : i32, i32
  }
  func.func @transform_10(%arg0: i32) -> (i32, i32) {
    %c0_i32 = arith.constant 0 : i32
    %c0_i32_0 = arith.constant 0 : i32
    %c0_i32_1 = arith.constant 0 : i32
    return %c0_i32, %c0_i32_0 : i32, i32
  }
  func.func @transform_11(%arg0: i32) -> (i32, i32) {
    %c0_i32 = arith.constant 0 : i32
    %c0_i32_0 = arith.constant 0 : i32
    %c0_i32_1 = arith.constant 0 : i32
    return %c0_i32, %c0_i32_0 : i32, i32
  }
  func.func @transform_12(%arg0: i32) -> (i32, i32) {
    %c0_i32 = arith.constant 0 : i32
    %c0_i32_0 = arith.constant 0 : i32
    %c0_i32_1 = arith.constant 0 : i32
    return %c0_i32, %c0_i32_0 : i32, i32
  }
  func.func @transform_13(%arg0: i32) -> (i32, i32) {
    %c0_i32 = arith.constant 0 : i32
    %c0_i32_0 = arith.constant 0 : i32
    %c0_i32_1 = arith.constant 0 : i32
    return %c0_i32, %c0_i32_0 : i32, i32
  }
  func.func @transform_14(%arg0: i32) -> (i32, i32) {
    %c0_i32 = arith.constant 0 : i32
    %c0_i32_0 = arith.constant 0 : i32
    %c0_i32_1 = arith.constant 0 : i32
    return %c0_i32, %c0_i32_0 : i32, i32
  }
  func.func @transform_15(%arg0: i32) -> (i32, i32) {
    %c0_i32 = arith.constant 0 : i32
    %c0_i32_0 = arith.constant 0 : i32
    %c0_i32_1 = arith.constant 0 : i32
    return %c0_i32, %c0_i32_0 : i32, i32
  }
  func.func @transform_16(%arg0: i32) -> (i32, i32) {
    %c0_i32 = arith.constant 0 : i32
    %c0_i32_0 = arith.constant 0 : i32
    %c0_i32_1 = arith.constant 0 : i32
    return %c0_i32, %c0_i32_0 : i32, i32
  }
  func.func @transform_17(%arg0: i32) -> (i32, i32) {
    %c0_i32 = arith.constant 0 : i32
    %c0_i32_0 = arith.constant 0 : i32
    %c0_i32_1 = arith.constant 0 : i32
    return %c0_i32, %c0_i32_0 : i32, i32
  }
  func.func @transform_18(%arg0: i32) -> (i32, i32) {
    %c0_i32 = arith.constant 0 : i32
    %c0_i32_0 = arith.constant 0 : i32
    %c0_i32_1 = arith.constant 0 : i32
    return %c0_i32, %c0_i32_0 : i32, i32
  }
  func.func @transform_19(%arg0: i32) -> (i32, i32) {
    %c0_i32 = arith.constant 0 : i32
    %c0_i32_0 = arith.constant 0 : i32
    %c0_i32_1 = arith.constant 0 : i32
    return %c0_i32, %c0_i32_0 : i32, i32
  }
  func.func @transform_20(%arg0: i32) -> (i32, i32) {
    %c0_i32 = arith.constant 0 : i32
    %c0_i32_0 = arith.constant 0 : i32
    %c0_i32_1 = arith.constant 0 : i32
    return %c0_i32, %c0_i32_0 : i32, i32
  }
  func.func @transform_21(%arg0: i32) -> (i32, i32) {
    %c0_i32 = arith.constant 0 : i32
    %c0_i32_0 = arith.constant 0 : i32
    %c0_i32_1 = arith.constant 0 : i32
    return %c0_i32, %c0_i32_0 : i32, i32
  }
  func.func @transform_22(%arg0: i32) -> (i32, i32) {
    %c0_i32 = arith.constant 0 : i32
    %c0_i32_0 = arith.constant 0 : i32
    %c0_i32_1 = arith.constant 0 : i32
    return %c0_i32, %c0_i32_0 : i32, i32
  }
  func.func @transform_23(%arg0: i32) -> (i32, i32, i32) {
    %c0_i32 = arith.constant 0 : i32
    %c0_i32_0 = arith.constant 0 : i32
    %c0_i32_1 = arith.constant 0 : i32
    return %arg0, %c0_i32, %c0_i32_0 : i32, i32, i32
  }
}

</mosaic_0001>

<bundles_post_ra>
// kernel: tpu_custom_call.1
= control target key start
LH: loop header
LB: loop body
LE: loop exit
PB: predicated region body
PF: predicated region fallthrough
CT: control target
= control target key end

     0   :  { %s2448_s0 = inlined_call_operand.vmem [shape: f32[2,8,32], index: 0, kind: input, shape index: {}]   ;;  %s2449_s1 = inlined_call_operand.hbm [shape: f32[2,1,8], index: 1, kind: input, shape index: {}]   ;;  %s2450_s2 = inlined_call_operand.vmem [shape: f32[2,1,128], index: 2, kind: input, shape index: {}]   ;;  %s2451_s3 = inlined_call_operand.vmem [shape: bf16[32,32], index: 3, kind: input, shape index: {}]   ;;  %s2452_s4 = inlined_call_operand.vmem [shape: f32[1,32], index: 4, kind: input, shape index: {}]   ;;  %s2453_s5 = inlined_call_operand.vmem [shape: bf16[32,32], index: 5, kind: input, shape index: {}]   ;;  %s2454_s6 = inlined_call_operand.vmem [shape: f32[1,32], index: 6, kind: input, shape index: {}]   ;;  %s2455_s7 = inlined_call_operand.vmem [shape: bf16[32,32], index: 7, kind: input, shape index: {}]   ;;  %s2456_s8 = inlined_call_operand.vmem [shape: f32[1,32], index: 8, kind: input, shape index: {}]   ;;  %s2457_s9 = inlined_call_operand.vmem [shape: bf16[32,32], index: 9, kind: input, shape index: {}]   ;;  %s2458_s10 = inlined_call_operand.vmem [shape: f32[1,32], index: 10, kind: input, shape index: {}]   ;;  %s2459_s11 = inlined_call_operand.vmem [shape: f32[1,32], index: 11, kind: input, shape index: {}]   ;;  %s2460_s12 = inlined_call_operand.vmem [shape: f32[1,32], index: 12, kind: input, shape index: {}]   ;;  %s2461_s13 = inlined_call_operand.vmem [shape: bf16[32,64], index: 13, kind: input, shape index: {}]   ;;  %s2462_s14 = inlined_call_operand.vmem [shape: f32[1,64], index: 14, kind: input, shape index: {}]   ;;  %s2463_s15 = inlined_call_operand.vmem [shape: bf16[64,32], index: 15, kind: input, shape index: {}]   ;;  %s2464_s16 = inlined_call_operand.vmem [shape: f32[1,32], index: 16, kind: input, shape index: {}]   ;;  %s2465_s17 = inlined_call_operand.vmem [shape: f32[1,32], index: 17, kind: input, shape index: {}]   ;;  %s2466_s18 = inlined_call_operand.vmem [shape: f32[1,32], index: 18, kind: input, shape index: {}]   ;;  %s2467_s19 = inlined_call_operand.vmem [shape: bf16[32,128], index: 19, kind: input, shape index: {}]   ;;  %s2468_s20 = inlined_call_operand.vmem [shape: f32[1,128], index: 20, kind: input, shape index: {}]   ;;  %s2469_s21 = inlined_call_operand.vmem [shape: bf16[128,4], index: 21, kind: input, shape index: {}]   ;;  %s2470_s22 = inlined_call_operand.vmem [shape: f32[1,4], index: 22, kind: input, shape index: {}]   ;;  %s2471_s23 = inlined_call_operand.hbm [shape: f32[2,1,4], index: 23, kind: output, shape index: {}]  }
   0x1   :  { %2488 = sst [smem:[#allocation14_spill]] %s2448_s0 }
   0x2   :  { %2489 = sst [smem:[#allocation15_spill]] %s2449_s1 }
   0x3   :  { %2490 = sst [smem:[#allocation16_spill]] %s2450_s2 }
   0x4   :  { %2491 = sst [smem:[#allocation17_spill]] %s2451_s3 }
   0x5   :  { %2492 = sst [smem:[#allocation18_spill]] %s2452_s4 }
   0x6   :  { %2493 = sst [smem:[#allocation19_spill]] %s2453_s5 }
   0x7   :  { %2494 = sst [smem:[#allocation20_spill]] %s2454_s6 }
   0x8   :  { %2495 = sst [smem:[#allocation21_spill]] %s2455_s7 }
   0x9   :  { %2496 = sst [smem:[#allocation22_spill]] %s2468_s20 }
   0xa   :  { %2497 = sst [smem:[#allocation23_spill]] %s2470_s22 }
   0xb   :  { %2498 = sst [smem:[#allocation24_spill]] %s2471_s23 }
   0xc   :  { %28 = vsyncpa [#allocation3], 0 }
   0xd   :  { %30 = vsyncpa [#allocation3 + $0x1], 0 }
   0xe   :  { %31 = vsyncpa [#allocation4], 0 }
   0xf   :  { %33 = vsyncpa [#allocation4 + $0x1], 0  ;;  %s2106_s4 = smov 0   ;;  %s2108_s30 = smov 0  }
  0x10   :  { %s2110_s24 = smov 0   ;;  %s2112_s25 = smov 0  }
  0x11 LB: > { %2499 = sst [smem:[#allocation8_spill]] %s1968_s4  ;;  %s2127_s5 = sadd.s32 4294967295, %s1980_s25   ;;  %s1980_s25 = sphi %s2112_s25, %s2531_s25   ;;  %s1976_s24 = sphi %s2110_s24, %s2533_s24   ;;  %s1972_s30 = sphi %s2108_s30, %s2535_s30   ;;  %s1968_s4 = sphi %s2106_s4, %s2534_s4  }
  0x12   : > { %2500 = sst [smem:[#allocation9_spill]] %s1976_s24  ;;  %s1626_s1 = sadd.s32 4294967294, %s1980_s25  }
  0x13   : > { %s2131_s26 = sadd.s32 1, %s1980_s25   ;;  %s72_s2 = sadd.s32 1, %s1976_s24 }
  0x14   : > { %2501 = sst [smem:[#allocation10_spill]] %s2131_s26  ;;  %s69_s6 = ssub.s32 %s1980_s25, %s2131_s26 }
  0x15   : > { %p79_p0 = scmp.ne.s32.totalorder %s1976_s24, %s1972_s30  ;;  %p70_p1 = scmp.eq.s32.totalorder %s69_s6, 0 }
  0x16   : > { %p80_p2 = scmp.eq.s32.totalorder %s1980_s25, 0  ;;  %p85_p3 = scmp.ne.s32.totalorder %s1972_s30, %s1968_s4 }
  0x17   : > { %p86_p4 = scmp.eq.s32.totalorder %s2127_s5, 0  ;;  %p555_p7 = scmp.eq.s32.totalorder %s2127_s5, 1 }
  0x18   : > { %s2143_s27 = scalar_select %p70_p1, %s1976_s24, %s72_s2  }
  0x19   : > { %p2145_p5 = por %p80_p2, %p79_p0  ;;  %p2149_p6 = por %p86_p4, %p85_p3 }
  0x1a   : > { %2502 = sst [smem:[#allocation11_spill]] %s2143_s27  ;;  %p561_p8 = scmp.eq.s32.totalorder %s1626_s1, 1 }
  0x1b   : > { %s2504_s28 = scalar_select %p2149_p6, 1, 0 }
  0x1c   : > { %p1818_p10 = scmp.lt.s32.totalorder %s1980_s25, 2  ;;  %p2156_p11 = por %p555_p7, %p79_p0 }
  0x1d   : > { %p2160_p12 = por %p561_p8, %p85_p3  ;;  %s648_s0 = sand.u32 1, %s1976_s24  }
  0x1e   : > { %s2505_s29 = scalar_select %p2156_p11, 1, 0 }
  0x1f   : > { %s2507_s3 = scalar_select %p2160_p12, 1, 0 }
  0x20   : > { %2506 = sst [smem:[#allocation12_spill]] %s2505_s29  ;;  %s1629_s2 = sshll.u32 %s1980_s25, 4 }
  0x21   : > { %2508 = sst [smem:[#allocation13_spill]] %s2507_s3  ;;  %s651_s1 = scalar_lea.vmem [#allocation2], %s648_s0 }
  0x22   : > { %s2509_s26 = sld [smem:[#allocation15_spill]]  ;;  %s658_s23 = sshll.u32 %s651_s1, 4  ;;  %s2171_s23 = int_to_ptr.vmem [resolvable:$true] %s658_s23 }
  0x23   : > { %p2175_p13 = pnand %p1818_p10, %p2145_p5  ;;  %s649_s24 = scalar_lea.sflag [#allocation3], %s648_s0 }
  0x25   : > { %p1890_p3 = pneg %p2175_p13 }
  0x28   : > { %s2169_s4 = scalar_lea.hbm %s2509_s26, %s1629_s2  ;;  %s1893_s6 = scalar_lea.hbm %s2509_s26, 32 }
  0x29   : > { %s1888_s3 = scalar_lea.hbm %s2169_s4, 16  ;;  %p1894_p5 = scmp.lt.s32.totalorder %s2169_s4, %s2509_s26 }
  0x2a   : > { %p1889_p2 = scmp.ne.s32.totalorder %s2169_s4, %s1888_s3  ;;  %p1895_p8 = scmp.lt.s32.totalorder %s1893_s6, %s1888_s3 }
  0x2c   : > { %p1891_p4 = pnand %p1890_p3, %p1889_p2  ;;  %p1896_p10 = por %p1895_p8, %p1894_p5 }
  0x2e   : > { %p1892_p7 = pneg %p1891_p4 }
  0x30   : > { %p1897_p9 = pnand %p1896_p10, %p1892_p7 }
  0x32   : > { %1900 = shalt.err (!%p1897_p9)
}
  0x33   : > { %s1901_s0 = scalar_lea.vmem %s2171_s23, 16  ;;  %s1982_s22 = smov [#allocation2]  }
  0x34   : > { %p1902_p0 = scmp.ne.s32.totalorder %s2171_s23, %s1901_s0  ;;  %s1906_s20 = sshll.u32 %s1982_s22, 4  ;;  %s1907_s20 = int_to_ptr.vmem [resolvable:$false] %s1906_s20 }
  0x35   : > { %s1908_s27 = scalar_lea.vmem %s1907_s20, 32  ;;  %p1909_p4 = scmp.lt.s32.totalorder %s2171_s23, %s1907_s20 }
  0x36   : > { %p1904_p1 = pnand %p1902_p0, %p1890_p3  ;;  %p1910_p12 = scmp.lt.s32.totalorder %s1908_s27, %s1901_s0 }
  0x38   : > { %p1905_p2 = pneg %p1904_p1  ;;  %p1911_p11 = por %p1910_p12, %p1909_p4 }
  0x3a   : > { %p1912_p6 = pnand %p1911_p11, %p1905_p2 }
  0x3c   : > { %1915 = shalt.err (!%p1912_p6)
}
  0x3d   : > { %1813 = dma.hbm_to_vmem [thread:$0]  (!%p2175_p13), %s2169_s4, 16, %s2171_s23, %s649_s24  }
  0x3e   : > { %p2511_p9 = scmp.lt.s32.totalorder %s1980_s25, 3  ;;  %p2512_p7 = scmp.ge.s32.totalorder %s1980_s25, 1 }
  0x40   : > { %p670_p0 = pnand %p2512_p7, %p2511_p9 }
  0x41   : > { %s2204_s22 = sand.u32 (!%p670_p0), 1, %s1972_s30   ;;  %p2513_p6 = scmp.ne.s32.totalorder (!%p670_p0), %s2504_s28, 0 }
  0x42   : > { %673 = sbr.rel (%p670_p0) target bundleno = 2657 (0xa61), region = 112  ;;  %s676_s20 = scalar_lea.sflag (!%p670_p0), [#allocation3], %s2204_s22 }
  0x47   : > { %1959 = dma.done.wait (%p2513_p6), %s676_s20, 16  }
  0x48   : > { %1961 = vsyncadd (%p2513_p6), %s676_s20, 4294967280  ;;  %p746_p11 = scmp.lt.s32.totalorder %s2127_s5, 1  ;;  %v1983_v0 = vmov 0.0   ;;  %vm1984_vm0 = vmmov 0   ;;  %s2514_s29 = sld [smem:[#allocation14_spill]]  ;;  %vm780_vm1 = vcmask 261120   ;;  %v1002_v32 = vlaneseq }
  0x49   : > { %1714 = vmatprep.subr.bf16.mxu1 %v1983_v0  ;;  %1718 = vmatprep.mubr.msk.bf16.mxu1 %vm1984_vm0, %v1983_v0  ;;  %s2515_s7 = sld [smem:[#allocation17_spill]]  ;;  %v1640_v24 = vld [vmem:[%s2456_s8] ss:$0 sm:$0xff]  ;;  %vm1025_vm2 = vcmask 1043456   ;;  %vm1008_vm3 = vcmask 64512   ;;  %v1860_v51 = vld [vmem:[%s2457_s9 + $0x8] sm:$0xff]  }
  0x4a   : > { %s2217_s23 = scalar_select %p746_p11, %s2127_s5, 1  ;;  %1744 = vmatprep.subr.bf16.mxu0 %v1983_v0  ;;  %1746 = vmatprep.mubr.msk.bf16.mxu0 %vm1984_vm0, %v1983_v0  ;;  %v1003_v35 = vshrl.u32 %v1002_v32, 7  ;;  %v1861_v56 = vld [vmem:[%s2457_s9] sm:$0xff]   ;;  %vm1283_vm4 = vcmask 523264   ;;  %vm1527_vm5 = vcmask 24576  }
  0x4b   : > { %s2516_s26 = sld [smem:[#allocation19_spill]]  ;;  %v1646_v62 = vld [vmem:[%s2458_s10] ss:$0 sm:$0xff]  ;;  %s1675_s6 = sshll.u32 %s2127_s5, 4 }
  0x4c   : > { %s1631_s4 = sshll.u32 %s2217_s23, 3  ;;  %s2518_s27 = sld [smem:[#allocation20_spill]]  ;;  %v1004_v37 = vsub.s32 0, %v1003_v35 }
  0x4d   : > { %s2519_s24 = sld [smem:[#allocation18_spill]]  ;;  %s745_s1 = scalar_lea.vmem [#allocation5], %s2204_s22 }
  0x4e   : > { %s749_s2 = scalar_lea.vmem %s2514_s29, %s1631_s4  ;;  %s2517_s29 = sld [smem:[#allocation21_spill]] }
  0x4f   : > { %v1854_v1 = vld [vmem:[%s2515_s7 + $0x8] sm:$0xff]   ;;  %v1855_v2 = vld [vmem:[%s2515_s7] sm:$0xff]   ;;  %s2521_s0 = sld [smem:[#allocation22_spill]] }
  0x50   : > { %1715 = vmatpush3.bf16.msra.mxu1 %v1854_v1  ;;  %v2232_v3 = vld [vmem:[%s749_s2] sm:$0xff]  ;;  %s2520_s2 = scalar_lea.vmem [#allocation2], %s2204_s22  ;;  %s2522_s4 = sld [smem:[#allocation16_spill]] }
  0x51   : > { %1716 = vmatprep.subr.bf16.mxu1 %v1983_v0  ;;  %v1856_v4 = vld [vmem:[%s2516_s26 + $0x8] sm:$0xff]   ;;  %v756_v5 = vpack.c.bf16 %v2232_v3, %v2232_v3  ;;  %v1857_v6 = vld [vmem:[%s2516_s26] sm:$0xff]   ;;  %s2523_s28 = sld [smem:[#allocation23_spill]] }
  0x52   : > { %v1636_v13 = vld [vmem:[%s2518_s27] ss:$0 sm:$0xff]  ;;  %s2525_s27 = sld [smem:[#allocation24_spill]] }
  0x53   : > { %v1632_v18 = vld [vmem:[%s2519_s24] ss:$0 sm:$0xff]  ;;  %s1985_s24 = smov [#allocation5]  }
  0x54   : > { %1717 = vmatpush3.bf16.msra.mxu1 %v1855_v2  ;;  %v1858_v7 = vld [vmem:[%s2517_s29 + $0x8] sm:$0xff]   ;;  %v1859_v8 = vld [vmem:[%s2517_s29] sm:$0xff]   ;;  %s1920_s3 = sshll.u32 %s1985_s24, 4  ;;  %s1921_s3 = int_to_ptr.vmem [resolvable:$false] %s1920_s3 }
  0x55   : > { %1722 = vmatprep.subr.bf16.mxu1 %v1983_v0  ;;  %v755_v33 = vld [vmem:[%s2520_s2] sm:$0x1]  ;;  %s2524_s2 = sld [smem:[#allocation12_spill]] }
  0x56   : > { %v999_v34 = vsub.f32 1.0, %v755_v33  ;;  %s752_s7 = scalar_lea.vmem %s2522_s4, %s2217_s23  ;;  %s1530_s4 = scalar_lea.sflag [#allocation4], %s2204_s22 }
  0x57   : > { %1719 = vmatmul.mubr.msk.bf16.vlgmr.msra.gmra.mxu1 %vm780_vm1, %v756_v5 }
  0x58   : > { %1723 = vmatpush3.bf16.msra.mxu1 %v1856_v4  ;;  %1726 = vmatprep.mubr.msk.bf16.mxu1 %vm1984_vm0, %v1983_v0  ;;  %v1000_v36 = vmul.f32 -1e+09, %v999_v34  ;;  %s2405_s20 = scalar_lea.hbm %s2525_s27, %s1675_s6 }
  0x59   : > { %1724 = vmatprep.subr.bf16.mxu1 %v1983_v0 }
  0x5a   : > { %v1005_v38 = vrot.slane %v1000_v36, %v1004_v37 }
  0x5b   : > { %p2526_p13 = scmp.ne.s32.totalorder %s2524_s2, 0 }
  0x5c   : > { %1725 = vmatpush3.bf16.msra.mxu1 %v1857_v6 }
  0x5d   : > { %1730 = vmatprep.subr.bf16.mxu1 %v1983_v0 }
  0x5f   : > { %1727 = vmatmul.mubr.msk.bf16.vlgmr.msra.gmra.mxu1 %vm780_vm1, %v756_v5 }
  0x60   : > { %1734 = vmatprep.mubr.msk.bf16.mxu1 %vm1984_vm0, %v1983_v0  ;;  %1731 = vmatpush3.bf16.msra.mxu1 %v1858_v7 }
  0x61   : > { %1732 = vmatprep.subr.bf16.mxu1 %v1983_v0 }
  0x64   : > { %1733 = vmatpush3.bf16.msra.mxu1 %v1859_v8 }
  0x65   : > { %1738 = vmatprep.subr.bf16.mxu1 %v1983_v0 }
  0x67   : > { %1735 = vmatmul.mubr.msk.bf16.vlgmr.msra.gmra.mxu1 %vm780_vm1, %v756_v5 }
  0x68   : > { %1740 = vmatprep.mubr.msk.bf16.mxu1 %vm1984_vm0, %v1983_v0 }
 0x117   : > { %v818_v9 = vpop.f32.mrf.mxu1 }
 0x118   : > { %v819_v22 = vadd.f32 %v1632_v18, %v818_v9  ;;  %v1650_v18 = vld [vmem:[%s2459_s11] ss:$0 sm:$0xff] }
 0x119   : > { %v1720_v10 = vpop.f32.mrf.mxu1 }
 0x11a   : > { %v950_v23 = vpack.c.bf16 %v819_v22, %v819_v22 }
 0x11b   : > { %v821_v11 = vpop.f32.mrf.mxu1 }
 0x11d   : > { %v1721_v12 = vpop.f32.mrf.mxu1 }
 0x11f   : > { %v881_v14 = vpop.f32.mrf.mxu1 }
 0x120   : > { %v882_v15 = vadd.f32 %v1636_v13, %v881_v14  ;;  %v1862_v13 = vld [vmem:[%s2461_s13 + $0x8] sm:$0xff]  }
 0x121   : > { %v1728_v16 = vpop.f32.mrf.mxu1 }
 0x122   : > { %v951_v17 = vpack.c.bf16 %v882_v15, %v882_v15 }
 0x123   : > { %v884_v19 = vpop.f32.mrf.mxu1 }
 0x124   : > { %v956_v20 = vsel %vm780_vm1, %v951_v17, 0 }
 0x125   : > { %v1729_v21 = vpop.f32.mrf.mxu1  ;;  %1739 = vmatpush3.bf16.xpose.msra.mxu1 %v956_v20  ;;  %v1651_v20 = vld [vmem:[%s2460_s12] ss:$0 sm:$0xff] }
 0x126   : > { %1750 = vmatprep.subr.bf16.mxu1 %v1983_v0 }
 0x127   : > { %v944_v25 = vpop.f32.mrf.mxu1 }
 0x128   : > { %v945_v26 = vadd.f32 %v1640_v24, %v944_v25  ;;  %v1864_v24 = vld [vmem:[%s2463_s15 + $0x18] sm:$0xff]   ;;  %v1865_v25 = vld [vmem:[%s2463_s15 + $0x10] sm:$0xff]  }
 0x129   : > { %v1736_v27 = vpop.f32.mrf.mxu1 }
 0x12a   : > { %v1021_v28 = vpack.c.bf16 %v945_v26, %v945_v26  ;;  %v1866_v26 = vld [vmem:[%s2463_s15 + $0x8] sm:$0xff]   ;;  %v1867_v27 = vld [vmem:[%s2463_s15] sm:$0xff]  }
 0x12b   : > { %v947_v29 = vpop.f32.mrf.mxu1 }
 0x12c   : > { %1741 = vmatmul.mubr.msk.bf16.vlgmr.msra.gmra.mxu1 %vm780_vm1, %v950_v23  ;;  %v1027_v30 = vsel %vm1025_vm2, %v1021_v28, 0  ;;  %v1652_v28 = vld [vmem:[%s2462_s14] ss:$0 sm:$0xff] }
 0x12d   : > { %1754 = vmatprep.mubr.msk.bf16.mxu1 %vm1984_vm0, %v1983_v0  ;;  %v1737_v31 = vpop.f32.mrf.mxu1  ;;  %1745 = vmatpush3.bf16.msra.mxu0 %v1027_v30 }
 0x12e   : > { %1758 = vmatprep.subr.bf16.mxu0 %v1983_v0  ;;  %1751 = vmatpush3.bf16.msra.mxu1 %v1860_v51 }
 0x12f   : > { %1752 = vmatprep.subr.bf16.mxu1 %v1983_v0 }
 0x132   : > { %1753 = vmatpush3.bf16.msra.mxu1 %v1861_v56 }
 0x133   : > { %1766 = vmatprep.subr.bf16.mxu1 %v1983_v0 }
 0x1ec   : > { %v992_v39 = vpop.f32.mrf.mxu1 }
 0x1ed   : > { %v998_v40 = vmul.f32 0.17677669, %v992_v39 }
 0x1ee   : > { %v1742_v41 = vpop.f32.mrf.mxu1 }
 0x1ef   : > { %v1007_v42 = vadd.f32 %v1005_v38, %v998_v40 }
 0x1f0   : > { %v995_v43 = vpop.f32.mrf.mxu1 }
 0x1f1   : > { %v1009_v44 = vsel %vm1008_vm3, %v1007_v42, -inf }
 0x1f2   : > { %1010 = vmax.xlane.f32.xlu0 %v1009_v44  ;;  %v1743_v45 = vpop.f32.mrf.mxu1  ;;  %v1656_v44 = vld [vmem:[%s2464_s16] ss:$0 sm:$0xff] }
 0x27b   : > { %v1011_v46 = vpop.xlane.xlu0 %1010 }
 0x27c   : > { %v1012_v47 = vsub.f32 %v1007_v42, %v1011_v46 }
 0x27e   : > { %v1013_v48 = vmul.f32 1.442695, %v1012_v47 }
 0x280   : > { %1878 = vpow2.f32 %v1013_v48 }
 0x28d   : > { %v1879_v49 = vpop.eup %1878 }
 0x28e   : > { %v1015_v50 = vsel %vm1008_vm3, %v1879_v49, 0.0 }
 0x28f   : > { %1016 = vadd.xlane.f32.xlu0 %v1015_v50 }
 0x318   : > { %v1017_v52 = vpop.xlane.xlu0 %1016 }
 0x319   : > { %1880 = vrcp.f32 %v1017_v52 }
 0x326   : > { %v1881_v53 = vpop.eup %1880 }
 0x327   : > { %v1019_v54 = vmul.f32 %v1881_v53, %v1879_v49 }
 0x329   : > { %v1020_v55 = vpack.c.bf16 %v1019_v54, %v1019_v54 }
 0x32b   : > { %1747 = vmatmul.mubr.msk.bf16.vlgmr.msra.gmra.mxu0 %vm1008_vm3, %v1020_v55 }
 0x32c   : > { %1762 = vmatprep.mubr.msk.bf16.mxu0 %vm1984_vm0, %v1983_v0  ;;  %1759 = vmatpush3.bf16.msra.mxu0 %v1862_v13  ;;  %v1876_v13 = vld [vmem:[%s2469_s21 + $0x8] sm:$0xff]  }
 0x32d   : > { %1760 = vmatprep.subr.bf16.mxu0 %v1983_v0 }
 0x3eb   : > { %v1063_v57 = vpop.f32.mrf.mxu0 }
 0x3ec   : > { %v1069_v58 = vpack.c.bf16 %v1063_v57, %v1063_v57  ;;  %v1868_v57 = vld [vmem:[%s2467_s19 + $0x8] sm:$0xff]  }
 0x3ed   : > { %v1748_v59 = vpop.f32.mrf.mxu0 }
 0x3ee   : > { %1755 = vmatmul.mubr.msk.bf16.vlgmr.msra.gmra.mxu1 %vm780_vm1, %v1069_v58  ;;  %v1869_v58 = vld [vmem:[%s2467_s19] sm:$0xff]  }
 0x3ef   : > { %v1066_v60 = vpop.f32.mrf.mxu0  ;;  %1774 = vmatprep.mubr.msk.bf16.mxu1 %vm1984_vm0, %v1983_v0  ;;  %1767 = vmatpush3.bf16.msra.mxu1 %v1864_v24 }
 0x3f0   : > { %1768 = vmatprep.subr.bf16.mxu1 %v1983_v0 }
 0x3f1   : > { %v1749_v61 = vpop.f32.mrf.mxu0 }
 0x3f3   : > { %1769 = vmatpush3.bf16.msra.mxu1 %v1865_v25 }
 0x3f4   : > { %1770 = vmatprep.subr.bf16.mxu1 %v1983_v0 }
 0x3f7   : > { %1771 = vmatpush3.bf16.msra.mxu1 %v1866_v26 }
 0x3f8   : > { %1772 = vmatprep.subr.bf16.mxu1 %v1983_v0 }
 0x3fb   : > { %1773 = vmatpush3.bf16.msra.mxu1 %v1867_v27 }
 0x4ae   : > { %v1130_v63 = vpop.f32.mrf.mxu1 }
 0x4af   : > { %v1131_v1 = vadd.f32 %v1646_v62, %v1130_v63  ;;  %v1662_v63 = vld [vmem:[%s2465_s17] ss:$0 sm:$0xff] }
 0x4b0   : > { %v1756_v2 = vpop.f32.mrf.mxu1 }
 0x4b1   : > { %v1136_v4 = vadd.f32 %v1131_v1, %v2232_v3  ;;  %v1863_v3 = vld [vmem:[%s2461_s13] sm:$0xff]  }
 0x4b2   : > { %v1133_v5 = vpop.f32.mrf.mxu1  ;;  %1761 = vmatpush3.bf16.msra.mxu0 %v1863_v3  ;;  %v1663_v2 = vld [vmem:[%s2466_s18] ss:$0 sm:$0xff] }
 0x4b3   : > { %v1137_v6 = vsel %vm780_vm1, %v1136_v4, 0.0  ;;  %1778 = vmatprep.subr.bf16.mxu0 %v1983_v0  ;;  %v1877_v3 = vld [vmem:[%s2469_s21] sm:$0xff]  }
 0x4b4   : > { %1138 = vadd.xlane.f32.xlu1 %v1137_v6  ;;  %v1757_v7 = vpop.f32.mrf.mxu1  ;;  %v1870_v6 = vld [vmem:[%s2469_s21 + $0x38] sm:$0xff]  }
 0x53d   : > { %v1139_v8 = vpop.xlane.xlu1 %1138 }
 0x53e   : > { %v1141_v9 = vmul.f32 0.03125, %v1139_v8  ;;  %v1871_v8 = vld [vmem:[%s2469_s21 + $0x30] sm:$0xff]  }
 0x540   : > { %v1142_v10 = vsub.f32 %v1136_v4, %v1141_v9  ;;  %v1872_v9 = vld [vmem:[%s2469_s21 + $0x28] sm:$0xff]  }
 0x542   : > { %v1143_v11 = vmul.f32 %v1142_v10, %v1142_v10 }
 0x544   : > { %v1144_v12 = vsel %vm780_vm1, %v1143_v11, 0.0  ;;  %v1874_v11 = vld [vmem:[%s2469_s21 + $0x18] sm:$0xff]  }
 0x545   : > { %1145 = vadd.xlane.f32.xlu1 %v1144_v12  ;;  %v1875_v12 = vld [vmem:[%s2469_s21 + $0x10] sm:$0xff]  }
 0x5ce   : > { %v1146_v14 = vpop.xlane.xlu1 %1145 }
 0x5cf   : > { %v1147_v15 = vmul.f32 0.03125, %v1146_v14  ;;  %v1362_v14 = vld [vmem:[%s2521_s0] sm:$0x1]  ;;  %s1542_s0 = sshll.u32 %s745_s1, 4  ;;  %s2407_s0 = int_to_ptr.vmem [resolvable:$true] %s1542_s0 }
 0x5d0   : > { %s1916_s5 = scalar_lea.vmem %s2407_s0, 16  ;;  %p1923_p5 = scmp.lt.s32.totalorder %s2407_s0, %s1921_s3 }
 0x5d1   : > { %v1148_v16 = vadd.f32 1e-05, %v1147_v15  ;;  %p1917_p12 = scmp.ne.s32.totalorder %s2407_s0, %s1916_s5 }
 0x5d3   : > { %1882 = vrsqrt.f32 %v1148_v16  ;;  %p1918_p1 = pnand %p1917_p12, %p2526_p13 }
 0x5d5   : > { %p1919_p3 = pneg %p1918_p1 }
 0x5e0   : > { %v1883_v17 = vpop.eup %1882 }
 0x5e1   : > { %v1150_v19 = vmul.f32 %v1883_v17, %v1142_v10  ;;  %v1873_v10 = vld [vmem:[%s2469_s21 + $0x20] sm:$0xff]  }
 0x5e2   : > { %v1419_v17 = vld [vmem:[%s752_s7] sm:$0x1] }
 0x5e3   : > { %v1158_v21 = vmul.f32 %v1650_v18, %v1150_v19 }
 0x5e5   : > { %v1166_v22 = vadd.f32 %v1651_v20, %v1158_v21 }
 0x5e7   : > { %v1167_v23 = vpack.c.bf16 %v1166_v22, %v1166_v22 }
 0x5e9   : > { %1763 = vmatmul.mubr.msk.bf16.vlgmr.msra.gmra.mxu0 %vm780_vm1, %v1167_v23  ;;  %v1438_v23 = vld [vmem:[%s2523_s28] sm:$0x1]  ;;  %s1922_s28 = scalar_lea.vmem %s1921_s3, 32 }
 0x5ea   : > { %1782 = vmatprep.mubr.msk.bf16.mxu0 %vm1984_vm0, %v1983_v0  ;;  %1779 = vmatpush3.bf16.msra.mxu0 %v1868_v57  ;;  %p1924_p8 = scmp.lt.s32.totalorder %s1922_s28, %s1916_s5 }
 0x5eb   : > { %1780 = vmatprep.subr.bf16.mxu0 %v1983_v0 }
 0x5ec   : > { %p1925_p10 = por %p1924_p8, %p1923_p5 }
 0x5ee   : > { %1781 = vmatpush3.bf16.msra.mxu0 %v1869_v58  ;;  %p1926_p2 = pnand %p1925_p10, %p1919_p3 }
 0x5ef   : > { %1786 = vmatprep.subr.bf16.mxu0 %v1983_v0 }
 0x6a9   : > { %v1228_v29 = vpop.f32.mrf.mxu0 }
 0x6aa   : > { %v1229_v30 = vadd.f32 %v1652_v28, %v1228_v29 }
 0x6ab   : > { %v1764_v31 = vpop.f32.mrf.mxu0 }
 0x6ac   : > { %v1234_v32 = vmul.f32 %v1229_v30, %v1229_v30 }
 0x6ad   : > { %v1231_v33 = vpop.f32.mrf.mxu0 }
 0x6ae   : > { %v1235_v34 = vmul.f32 %v1234_v32, %v1229_v30 }
 0x6af   : > { %v1765_v35 = vpop.f32.mrf.mxu0 }
 0x6b0   : > { %v1236_v36 = vmul.f32 0.044715, %v1235_v34 }
 0x6b2   : > { %v1237_v37 = vadd.f32 %v1236_v36, %v1229_v30 }
 0x6b4   : > { %v1238_v38 = vmul.f32 0.7978846, %v1237_v37 }
 0x6b6   : > { %1884 = vtanh.f32 %v1238_v38 }
 0x6c3   : > { %v1885_v39 = vpop.eup %1884 }
 0x6c4   : > { %v1240_v40 = vadd.f32 1.0, %v1885_v39 }
 0x6c6   : > { %v1241_v41 = vmul.f32 0.5, %v1240_v40 }
 0x6c8   : > { %v1242_v42 = vmul.f32 %v1241_v41, %v1229_v30 }
 0x6ca   : > { %v1243_v43 = vpack.c.bf16 %v1242_v42, %v1242_v42 }
 0x6cc   : > { %1775 = vmatmul.mubr.msk.bf16.vlgmr.msra.gmra.mxu1 %vm1283_vm4, %v1243_v43 }
 0x78c   : > { %v1321_v45 = vpop.f32.mrf.mxu1 }
 0x78d   : > { %v1322_v46 = vadd.f32 %v1656_v44, %v1321_v45 }
 0x78e   : > { %v1776_v47 = vpop.f32.mrf.mxu1 }
 0x78f   : > { %v1327_v48 = vadd.f32 %v1322_v46, %v1166_v22 }
 0x790   : > { %v1324_v49 = vpop.f32.mrf.mxu1 }
 0x791   : > { %v1328_v50 = vsel %vm780_vm1, %v1327_v48, 0.0 }
 0x792   : > { %1329 = vadd.xlane.f32.xlu0 %v1328_v50  ;;  %v1777_v51 = vpop.f32.mrf.mxu1 }
 0x81b   : > { %v1330_v52 = vpop.xlane.xlu0 %1329 }
 0x81c   : > { %v1331_v53 = vmul.f32 0.03125, %v1330_v52 }
 0x81e   : > { %v1332_v54 = vsub.f32 %v1327_v48, %v1331_v53 }
 0x820   : > { %v1333_v55 = vmul.f32 %v1332_v54, %v1332_v54 }
 0x822   : > { %v1334_v56 = vsel %vm780_vm1, %v1333_v55, 0.0 }
 0x823   : > { %1335 = vadd.xlane.f32.xlu1 %v1334_v56 }
 0x8ac   : > { %v1336_v59 = vpop.xlane.xlu1 %1335 }
 0x8ad   : > { %v1337_v60 = vmul.f32 0.03125, %v1336_v59 }
 0x8af   : > { %v1338_v61 = vadd.f32 1e-05, %v1337_v60 }
 0x8b1   : > { %1886 = vrsqrt.f32 %v1338_v61 }
 0x8be   : > { %v1887_v62 = vpop.eup %1886 }
 0x8bf   : > { %v1340_v1 = vmul.f32 %v1887_v62, %v1332_v54 }
 0x8c1   : > { %v1348_v4 = vmul.f32 %v1662_v63, %v1340_v1 }
 0x8c3   : > { %v1356_v5 = vadd.f32 %v1663_v2, %v1348_v4 }
 0x8c5   : > { %v1357_v7 = vpack.c.bf16 %v1356_v5, %v1356_v5 }
 0x8c7   : > { %1783 = vmatmul.mubr.msk.bf16.vlgmr.msra.gmra.mxu0 %vm780_vm1, %v1357_v7 }
 0x8c8   : > { %1787 = vmatpush3.bf16.msra.mxu0 %v1870_v6  ;;  %1802 = vmatprep.mubr.msk.bf16.mxu0 %vm1984_vm0, %v1983_v0 }
 0x8c9   : > { %1788 = vmatprep.subr.bf16.mxu0 %v1983_v0 }
 0x8cc   : > { %1789 = vmatpush3.bf16.msra.mxu0 %v1871_v8 }
 0x8cd   : > { %1790 = vmatprep.subr.bf16.mxu0 %v1983_v0 }
 0x8d0   : > { %1791 = vmatpush3.bf16.msra.mxu0 %v1872_v9 }
 0x8d1   : > { %1792 = vmatprep.subr.bf16.mxu0 %v1983_v0 }
 0x8d4   : > { %1793 = vmatpush3.bf16.msra.mxu0 %v1873_v10 }
 0x8d5   : > { %1794 = vmatprep.subr.bf16.mxu0 %v1983_v0 }
 0x8d8   : > { %1795 = vmatpush3.bf16.msra.mxu0 %v1874_v11 }
 0x8d9   : > { %1796 = vmatprep.subr.bf16.mxu0 %v1983_v0 }
 0x8dc   : > { %1797 = vmatpush3.bf16.msra.mxu0 %v1875_v12 }
 0x8dd   : > { %1798 = vmatprep.subr.bf16.mxu0 %v1983_v0 }
 0x8e0   : > { %1799 = vmatpush3.bf16.msra.mxu0 %v1876_v13 }
 0x8e1   : > { %1800 = vmatprep.subr.bf16.mxu0 %v1983_v0 }
 0x8e4   : > { %1801 = vmatpush3.bf16.msra.mxu0 %v1877_v3 }
 0x987   : > { %v1412_v15 = vpop.f32.mrf.mxu0 }
 0x988   : > { %v1413_v16 = vadd.f32 %v1412_v15, %v1362_v14 }
 0x989   : > { %v1784_v18 = vpop.f32.mrf.mxu0 }
 0x98a   : > { %v1418_v0 = vmax.f32 %v1413_v16, 0.0 }
 0x98b   : > { %v1415_v19 = vpop.f32.mrf.mxu0 }
 0x98c   : > { %v1420_v20 = vmul.f32 %v1419_v17, %v1418_v0 }
 0x98d   : > { %v1785_v21 = vpop.f32.mrf.mxu0 }
 0x98e   : > { %v1421_v22 = vpack.c.bf16 %v1420_v20, %v1420_v20 }
 0x990   : > { %1803 = vmatmul.mubr.bf16.vlgmr.msra.gmra.mxu0 %v1421_v22 }
 0xa50   : > { %v1521_v24 = vpop.f32.mrf.mxu0 }
 0xa51   : > { %v1522_v25 = vadd.f32 %v1521_v24, %v1438_v23 }
 0xa52   : > { %v1804_v26 = vpop.f32.mrf.mxu0 }
 0xa53   : > { %1528 = vst.msk [vmem:[%s745_s1] sm:$0x1] %vm1527_vm5, %v1522_v25 }
 0xa54   : > { %v1524_v27 = vpop.f32.mrf.mxu0 }
 0xa55   : > { %1929 = shalt.err (!%p1926_p2)
}
 0xa56   : > { %s1930_s6 = scalar_lea.hbm %s2405_s20, 16  ;;  %s1934_s23 = scalar_lea.hbm %s2525_s27, 32 }
 0xa57   : > { %p1931_p4 = scmp.ne.s32.totalorder %s2405_s20, %s1930_s6  ;;  %p1935_p0 = scmp.lt.s32.totalorder %s2405_s20, %s2525_s27 }
 0xa58   : > { %p1936_p6 = scmp.lt.s32.totalorder %s1934_s23, %s1930_s6 }
 0xa59   : > { %p1932_p9 = pnand %p1931_p4, %p2526_p13 }
 0xa5a   : > { %p1937_p11 = por %p1936_p6, %p1935_p0 }
 0xa5b   : > { %p1933_p7 = pneg %p1932_p9 }
 0xa5d   : > { %p1938_p12 = pnand %p1937_p11, %p1933_p7 }
 0xa5f   : > { %1941 = shalt.err (!%p1938_p12)
}
 0xa60   : > { %1808 = dma.vmem_to_hbm [thread:$0]  (%p2526_p13), %s2407_s0, 16, %s2405_s20, %s1530_s4   ;;  %v1805_v28 = vpop.f32.mrf.mxu0 }
 0xa61 PF: > { %s2527_s5 = sld [smem:[#allocation8_spill]]  ;;  %p2530_p3 = scmp.ge.s32.totalorder %s1980_s25, 2 }
 0xa62   : > { %s2528_s3 = sld [smem:[#allocation13_spill]] }
 0xa67   : > { %s1554_s28 = sand.u32 1, %s2527_s5  }
 0xa68   : > { %p2529_p1 = scmp.ne.s32.totalorder %s2528_s3, 0  ;;  %s1555_s22 = scalar_lea.sflag [#allocation4], %s1554_s28 }
 0xa6a   : > { %p1815_p5 = pnand %p2530_p3, %p2529_p1 }
 0xa6c   : > { %p1816_p8 = pneg %p1815_p5 }
 0xa6e   : > { %1963 = dma.done.wait (%p1816_p8), %s1555_s22, 16  }
 0xa6f   : > { %1965 = vsyncadd (%p1816_p8), %s1555_s22, 4294967280  ;;  %s2531_s25 = sld [smem:[#allocation10_spill]]  ;;  %s2534_s4 = smov %s1972_s30 }
 0xa70   : > { %s2532_s6 = sld [smem:[#allocation9_spill]] }
 0xa71   : > { %s2533_s24 = sld [smem:[#allocation11_spill]] }
 0xa75   : > { %p36_p10 = scmp.ge.s32.totalorder %s2531_s25, 4  }
 0xa76   : > { %s2535_s30 = smov %s2532_s6 }
 0xa77   :  { %38 = sbr.rel (!%p36_p10) target bundleno = 17 (0x11), region = 163 }
 0xa7c   :  { %1559 = vsyncpa [#allocation3], 1 }
 0xa7d   :  { %1561 = vsyncpa [#allocation3 + $0x1], 1 }
 0xa7e   :  { %1562 = vsyncpa [#allocation4], 1 }
 0xa7f   :  { %1564 = vsyncpa [#allocation4 + $0x1], 1 }

</bundles_post_ra>
